<compile_context>
chip_gen: v7x
topology: tpu7x:2x2x1
jax: 0.10.0
libtpu: 0.0.40
codegen_flags: <defaults>
</compile_context>

<pallas_src>
import math
import functools

import jax
import jax.numpy as jnp
from jax.experimental import pallas as pl
from jax.experimental.pallas import tpu as pltpu

# ----------------------------- config (small, synthetic) --------------------
HIDDEN = 32                 # config.hidden_size
NUM_HEADS = 4               # config.num_attention_heads
NUM_MQ_HEADS = 2            # config.num_multi_query_heads
HEAD_DIM = HIDDEN // NUM_HEADS                      # 8
QKV_SIZE = HIDDEN + HEAD_DIM * NUM_MQ_HEADS * 2     # 64
ROPE_BASE = 500000.0
B = 2
L = 8

MXU_DTYPE = jnp.bfloat16    # MXU operand dtype (accumulation stays f32 everywhere)


# ----------------------------- fused QKV + rope + attention + dense ---------
def _fused_attention_kernel(x_ref, wqkv_ref, cos_ref, sin_ref, mask_ref,
                            wdense_ref, o_ref, ctx_ref, *,
                            num_heads, num_kv_heads, head_dim, mxu_dtype):
    # x_ref     : [1, L, HIDDEN]      input activations for this batch
    # wqkv_ref  : [HIDDEN, QKV]       bf16, Q columns pre-scaled by 1/sqrt(D)
    # cos_ref   : [1, L, D]           cos duplicated on both halves
    # sin_ref   : [1, L, D]           sin sign-folded as [-sin, sin]
    # mask_ref  : [1, 1, L, L]        additive mask
    # wdense_ref: [HIDDEN, HIDDEN]    bf16
    # o_ref     : [1, L, HIDDEN]      final attention output
    # ctx_ref   : [L, HIDDEN] bf16    VMEM scratch, per-head context columns
    hidden = num_heads * head_dim
    k_off = hidden
    v_off = hidden + num_kv_heads * head_dim
    half = head_dim // 2
    group = num_heads // num_kv_heads

    # --- fused QKV projection (MXU, bf16 operands, f32 accumulate).
    # The 1/sqrt(head_dim) query scale is already folded into wqkv's Q columns.
    x = x_ref[0].astype(mxu_dtype)                              # [L, HIDDEN]
    mixed = jnp.dot(x, wqkv_ref[...],
                    preferred_element_type=jnp.float32)         # [L, QKV] f32

    cos = cos_ref[0].astype(jnp.float32)                        # [L, D]
    sin = sin_ref[0].astype(jnp.float32)                        # [L, D]
    mask = mask_ref[0, 0].astype(jnp.float32)                   # [L, L]

    def rope(v):                                                # v: [L, D]
        # v*cos + rotate_half(v)*sin  (sin already sign-folded as [-s, s]).
        # TODO(synk): at real head_dim=128 use pltpu.roll(v, half, axis=-1) so
        # the rotation lands on the otherwise-idle XLU slot.
        rot = jnp.concatenate([v[:, half:], v[:, :half]], axis=-1)
        return v * cos + rot * sin

    # rope / cast the shared multi-query K and V heads once (2 tiny heads)
    k_heads, v_heads = [], []
    for j in range(num_kv_heads):
        kj = mixed[:, k_off + j * head_dim:k_off + (j + 1) * head_dim]
        vj = mixed[:, v_off + j * head_dim:v_off + (j + 1) * head_dim]
        k_heads.append(rope(kj).astype(mxu_dtype))
        v_heads.append(vj.astype(mxu_dtype))

    # per-head attention; context stored directly into ctx scratch columns
    # (no Python-list accumulation / jnp.concatenate at the end).
    for h in range(num_heads):
        j = h // group                                          # MQ sharing
        qh = rope(mixed[:, h * head_dim:(h + 1) * head_dim]).astype(mxu_dtype)
        # QK^T without an explicit K transpose: contract last dims of both.
        s = jax.lax.dot_general(qh, k_heads[j], (((1,), (1,)), ((), ())),
                                preferred_element_type=jnp.float32)   # [L, L]
        s = s + mask
        s = s - jnp.max(s, axis=-1, keepdims=True)              # f32 softmax
        p = jnp.exp(s)
        p = p * pl.reciprocal(jnp.sum(p, axis=-1, keepdims=True), approx=True)
        ctx_h = jnp.dot(p.astype(mxu_dtype), v_heads[j],
                        preferred_element_type=jnp.float32)     # [L, D]
        ctx_ref[:, h * head_dim:(h + 1) * head_dim] = ctx_h.astype(ctx_ref.dtype)

    # --- fused output projection (language_expert_dense), still in VMEM.
    o_ref[0] = jnp.dot(ctx_ref[...], wdense_ref[...],
                       preferred_element_type=jnp.float32).astype(o_ref.dtype)


def fused_vision_expert_attention(hidden_states, w_qkv_t, cos, sin,
                                  attention_mask, w_dense_t):
    """Single pallas_call: grid=(B,), everything per-batch stays in VMEM."""
    bsz, q_len, hid = hidden_states.shape
    assert hid == HIDDEN and HEAD_DIM % 2 == 0
    # fused QKV activation layout must be [Q | K | V] (column offsets below rely on it)
    assert w_qkv_t.shape == (HIDDEN, QKV_SIZE)
    assert w_dense_t.shape == (HIDDEN, HIDDEN)

    kernel = functools.partial(
        _fused_attention_kernel, num_heads=NUM_HEADS,
        num_kv_heads=NUM_MQ_HEADS, head_dim=HEAD_DIM, mxu_dtype=MXU_DTYPE)

    return pl.pallas_call(
        kernel,
        out_shape=jax.ShapeDtypeStruct((bsz, q_len, HIDDEN),
                                       hidden_states.dtype),
        grid=(bsz,),
        in_specs=[
            pl.BlockSpec((1, q_len, HIDDEN), lambda b: (b, 0, 0)),
            # weights: constant index_map -> DMA'd once, resident across steps
            pl.BlockSpec((HIDDEN, QKV_SIZE), lambda b: (0, 0)),
            pl.BlockSpec((1, q_len, HEAD_DIM), lambda b: (b, 0, 0)),
            pl.BlockSpec((1, q_len, HEAD_DIM), lambda b: (b, 0, 0)),
            pl.BlockSpec((1, 1, q_len, q_len), lambda b: (b, 0, 0, 0)),
            pl.BlockSpec((HIDDEN, HIDDEN), lambda b: (0, 0)),
        ],
        out_specs=pl.BlockSpec((1, q_len, HIDDEN), lambda b: (b, 0, 0)),
        scratch_shapes=[pltpu.VMEM((q_len, HIDDEN), MXU_DTYPE)],
        compiler_params=pltpu.CompilerParams(
            dimension_semantics=("parallel",)),
    )(hidden_states, w_qkv_t, cos, sin, attention_mask, w_dense_t)


# ----------------------------- forward (glue + kernel) ----------------------
def rope_tables(position_ids, head_dim, base):
    """Returns cos duplicated [c, c] and sin sign-folded [-s, s], each [B, L, D]."""
    inv_freq = 1.0 / (base ** (jnp.arange(0, head_dim, 2, dtype=jnp.float32)
                               / head_dim))
    freqs = position_ids.astype(jnp.float32)[..., None] * inv_freq    # [B, L, D/2]
    c, s = jnp.cos(freqs), jnp.sin(freqs)
    return (jnp.concatenate([c, c], axis=-1),
            jnp.concatenate([-s, s], axis=-1))


def prepare_params(w_qkv, w_dense):
    """torch Linear weights are [out, in]; transpose ONCE, fold the 1/sqrt(D)
    query scale into the Q columns (rope is linear, so scaling commutes with it),
    and pre-cast to bf16 so no per-call cast / w.T hits the hot path."""
    scale = 1.0 / math.sqrt(HEAD_DIM)
    w_qkv_t = w_qkv.T                                      # [HIDDEN, QKV]
    w_qkv_t = w_qkv_t.at[:, :HIDDEN].multiply(scale)       # scale only Q columns
    return {"w_qkv_t": w_qkv_t.astype(MXU_DTYPE),
            "w_dense_t": w_dense.T.astype(MXU_DTYPE)}


def vision_expert_attention_forward(hidden_states, position_ids,
                                    attention_mask, params):
    # FastRotaryEmbedding tables (applied inside the fused kernel)
    cos, sin = rope_tables(position_ids, HEAD_DIM, ROPE_BASE)
    # TODO(synk): past_key_value / use_cache KV-cache concat path and
    # output_attentions are not implemented (matches eval-time forward only).
    return fused_vision_expert_attention(hidden_states, params["w_qkv_t"], cos,
                                         sin, attention_mask,
                                         params["w_dense_t"])


# ----------------------------- pure-JAX reference ----------------------------
def reference_forward(hidden_states, position_ids, attention_mask,
                      w_qkv_t_f32, w_dense_t_f32):
    bsz, q_len, _ = hidden_states.shape
    mixed = hidden_states @ w_qkv_t_f32
    q, k, v = jnp.split(
        mixed, [HIDDEN, HIDDEN + HEAD_DIM * NUM_MQ_HEADS], axis=-1)
    q = q.reshape(bsz, q_len, NUM_HEADS, HEAD_DIM).transpose(0, 2, 1, 3)
    k = k.reshape(bsz, q_len, NUM_MQ_HEADS, HEAD_DIM).transpose(0, 2, 1, 3)
    v = v.reshape(bsz, q_len, NUM_MQ_HEADS, HEAD_DIM).transpose(0, 2, 1, 3)

    half = HEAD_DIM // 2
    inv_freq = 1.0 / (ROPE_BASE ** (jnp.arange(0, HEAD_DIM, 2,
                                               dtype=jnp.float32) / HEAD_DIM))
    freqs = position_ids.astype(jnp.float32)[..., None] * inv_freq
    cos_b = jnp.cos(freqs)[:, None, :, :]
    sin_b = jnp.sin(freqs)[:, None, :, :]

    def rope(x):
        x1, x2 = x[..., :half], x[..., half:]
        return jnp.concatenate(
            [x1 * cos_b - x2 * sin_b, x1 * sin_b + x2 * cos_b], axis=-1)

    q, k = rope(q), rope(k)
    group = NUM_HEADS // NUM_MQ_HEADS
    k = jnp.repeat(k, group, axis=1)
    v = jnp.repeat(v, group, axis=1)

    scores = (q / math.sqrt(HEAD_DIM)) @ jnp.swapaxes(k, -1, -2)
    scores = scores + attention_mask
    p = jax.nn.softmax(scores.astype(jnp.float32), axis=-1)
    ctx = p @ v
    ctx = ctx.transpose(0, 2, 1, 3).reshape(bsz, q_len, HIDDEN)
    return ctx @ w_dense_t_f32


# ----------------------------- main ------------------------------------------
if __name__ == "__main__":
    key = jax.random.PRNGKey(0)
    k_x, k_qkv, k_dense = jax.random.split(key, 3)

    hidden_states = jax.random.normal(k_x, (B, L, HIDDEN), dtype=jnp.float32)
    position_ids = jnp.tile(jnp.arange(L, dtype=jnp.int32)[None, :], (B, 1))

    # additive causal mask [B, 1, L, L]: 0 where attend, -1e9 where blocked
    causal = jnp.tril(jnp.ones((L, L), dtype=bool))
    attention_mask = jnp.where(causal, 0.0, -1e9).astype(jnp.float32)
    attention_mask = jnp.broadcast_to(attention_mask[None, None], (B, 1, L, L))

    # torch-style Linear weights are [out, in]
    w_qkv = 0.05 * jax.random.normal(k_qkv, (QKV_SIZE, HIDDEN), dtype=jnp.float32)
    w_dense = 0.05 * jax.random.normal(k_dense, (HIDDEN, HIDDEN), dtype=jnp.float32)
    params = prepare_params(w_qkv, w_dense)

    out = vision_expert_attention_forward(hidden_states, position_ids,
                                          attention_mask, params)
    out = jax.block_until_ready(out)

    ref = reference_forward(hidden_states, position_ids, attention_mask,
                            w_qkv.T, w_dense.T)
    assert out.shape == (B, L, HIDDEN)
    # bf16 weights / MXU operands (f32 accumulate, f32 softmax, approx EUP
    # reciprocal) vs a pure-f32 reference -> loosened tolerance.
    assert jnp.allclose(out, ref, atol=3e-2, rtol=3e-2), "mismatch vs reference"

    print("KERNEL_OK")
</pallas_src>

<mosaic_0001>
module attributes {stable_mosaic.version = 11 : i64} {
  func.func @_fused_attention_kernel(%arg0: i32, %arg1: memref<1x8x32xf32, #tpu.memory_space<vmem>>, %arg2: memref<32x64xbf16, #tpu.memory_space<vmem>>, %arg3: memref<1x8x8xf32, #tpu.memory_space<vmem>>, %arg4: memref<1x8x8xf32, #tpu.memory_space<vmem>>, %arg5: memref<1x1x8x8xf32, #tpu.memory_space<vmem>>, %arg6: memref<32x32xbf16, #tpu.memory_space<vmem>>, %arg7: memref<1x8x32xf32, #tpu.memory_space<vmem>>, %arg8: memref<8x32xbf16, #tpu.memory_space<vmem>>) attributes {dimension_semantics = [#tpu.dimension_semantics<parallel>], iteration_bounds = array<i64: 2>, scalar_prefetch = 0 : i64, scratch_operands = 1 : i64, tpu.core_type = #tpu.core_type<tc>, window_params = [{transform_indices = @transform_0, window_bounds = array<i64: 1, 8, 32>}, {pipeline_mode = #tpu.pipeline_mode<synchronous>, transform_indices = @transform_1, window_bounds = array<i64: 32, 64>}, {transform_indices = @transform_2, window_bounds = array<i64: 1, 8, 8>}, {transform_indices = @transform_3, window_bounds = array<i64: 1, 8, 8>}, {transform_indices = @transform_4, window_bounds = array<i64: 1, 1, 8, 8>}, {pipeline_mode = #tpu.pipeline_mode<synchronous>, transform_indices = @transform_5, window_bounds = array<i64: 32, 32>}, {transform_indices = @transform_6, window_bounds = array<i64: 1, 8, 32>}]} {
    %c0 = arith.constant 0 : index
    %c0_0 = arith.constant 0 : index
    %c0_1 = arith.constant 0 : index
    %0 = vector.load %arg1[%c0, %c0_0, %c0_1] : memref<1x8x32xf32, #tpu.memory_space<vmem>>, vector<1x8x32xf32>
    %1 = vector.shape_cast %0 : vector<1x8x32xf32> to vector<8x32xf32>
    %2 = arith.truncf %1 : vector<8x32xf32> to vector<8x32xbf16>
    %c0_2 = arith.constant 0 : index
    %c0_3 = arith.constant 0 : index
    %3 = vector.load %arg2[%c0_2, %c0_3] : memref<32x64xbf16, #tpu.memory_space<vmem>>, vector<32x64xbf16>
    %cst = arith.constant dense<0.000000e+00> : vector<8x64xf32>
    %4 = tpu.matmul %2, %3, %cst {dimension_numbers = #tpu.dot_dimension_numbers<[1], [0], [0], [1], [0, 0, 1, 1], [], []>} : vector<8x32xbf16>, vector<32x64xbf16>, vector<8x64xf32> -> vector<8x64xf32>
    %c0_4 = arith.constant 0 : index
    %c0_5 = arith.constant 0 : index
    %c0_6 = arith.constant 0 : index
    %5 = vector.load %arg3[%c0_4, %c0_5, %c0_6] : memref<1x8x8xf32, #tpu.memory_space<vmem>>, vector<1x8x8xf32>
    %6 = vector.shape_cast %5 : vector<1x8x8xf32> to vector<8x8xf32>
    %c0_7 = arith.constant 0 : index
    %c0_8 = arith.constant 0 : index
    %c0_9 = arith.constant 0 : index
    %7 = vector.load %arg4[%c0_7, %c0_8, %c0_9] : memref<1x8x8xf32, #tpu.memory_space<vmem>>, vector<1x8x8xf32>
    %8 = vector.shape_cast %7 : vector<1x8x8xf32> to vector<8x8xf32>
    %c0_10 = arith.constant 0 : index
    %c0_11 = arith.constant 0 : index
    %c0_12 = arith.constant 0 : index
    %c0_13 = arith.constant 0 : index
    %9 = vector.load %arg5[%c0_10, %c0_11, %c0_12, %c0_13] : memref<1x1x8x8xf32, #tpu.memory_space<vmem>>, vector<1x1x8x8xf32>
    %10 = vector.shape_cast %9 : vector<1x1x8x8xf32> to vector<8x8xf32>
    %11 = vector.extract_strided_slice %4 {offsets = [0, 32], sizes = [8, 8], strides = [1, 1]} : vector<8x64xf32> to vector<8x8xf32>
    %12 = vector.extract_strided_slice %4 {offsets = [0, 48], sizes = [8, 8], strides = [1, 1]} : vector<8x64xf32> to vector<8x8xf32>
    %13 = vector.extract_strided_slice %11 {offsets = [0, 4], sizes = [8, 4], strides = [1, 1]} : vector<8x8xf32> to vector<8x4xf32>
    %14 = vector.extract_strided_slice %11 {offsets = [0, 0], sizes = [8, 4], strides = [1, 1]} : vector<8x8xf32> to vector<8x4xf32>
    %15 = tpu.concatenate %13, %14 in 1 : vector<8x4xf32>, vector<8x4xf32> -> vector<8x8xf32>
    %16 = arith.mulf %11, %6 : vector<8x8xf32>
    %17 = arith.mulf %15, %8 : vector<8x8xf32>
    %18 = arith.addf %16, %17 : vector<8x8xf32>
    %19 = arith.truncf %18 : vector<8x8xf32> to vector<8x8xbf16>
    %20 = arith.truncf %12 : vector<8x8xf32> to vector<8x8xbf16>
    %21 = vector.extract_strided_slice %4 {offsets = [0, 40], sizes = [8, 8], strides = [1, 1]} : vector<8x64xf32> to vector<8x8xf32>
    %22 = vector.extract_strided_slice %4 {offsets = [0, 56], sizes = [8, 8], strides = [1, 1]} : vector<8x64xf32> to vector<8x8xf32>
    %23 = vector.extract_strided_slice %21 {offsets = [0, 4], sizes = [8, 4], strides = [1, 1]} : vector<8x8xf32> to vector<8x4xf32>
    %24 = vector.extract_strided_slice %21 {offsets = [0, 0], sizes = [8, 4], strides = [1, 1]} : vector<8x8xf32> to vector<8x4xf32>
    %25 = tpu.concatenate %23, %24 in 1 : vector<8x4xf32>, vector<8x4xf32> -> vector<8x8xf32>
    %26 = arith.mulf %21, %6 : vector<8x8xf32>
    %27 = arith.mulf %25, %8 : vector<8x8xf32>
    %28 = arith.addf %26, %27 : vector<8x8xf32>
    %29 = arith.truncf %28 : vector<8x8xf32> to vector<8x8xbf16>
    %30 = arith.truncf %22 : vector<8x8xf32> to vector<8x8xbf16>
    %31 = vector.extract_strided_slice %4 {offsets = [0, 0], sizes = [8, 8], strides = [1, 1]} : vector<8x64xf32> to vector<8x8xf32>
    %32 = vector.extract_strided_slice %31 {offsets = [0, 4], sizes = [8, 4], strides = [1, 1]} : vector<8x8xf32> to vector<8x4xf32>
    %33 = vector.extract_strided_slice %31 {offsets = [0, 0], sizes = [8, 4], strides = [1, 1]} : vector<8x8xf32> to vector<8x4xf32>
    %34 = tpu.concatenate %32, %33 in 1 : vector<8x4xf32>, vector<8x4xf32> -> vector<8x8xf32>
    %35 = arith.mulf %31, %6 : vector<8x8xf32>
    %36 = arith.mulf %34, %8 : vector<8x8xf32>
    %37 = arith.addf %35, %36 : vector<8x8xf32>
    %38 = arith.truncf %37 : vector<8x8xf32> to vector<8x8xbf16>
    %cst_14 = arith.constant dense<0.000000e+00> : vector<8x8xf32>
    %39 = tpu.matmul %38, %19, %cst_14 {dimension_numbers = #tpu.dot_dimension_numbers<[1], [1], [0], [0], [0, 0, 1, 0], [], []>} : vector<8x8xbf16>, vector<8x8xbf16>, vector<8x8xf32> -> vector<8x8xf32>
    %40 = arith.addf %39, %10 : vector<8x8xf32>
    %cst_15 = arith.constant dense<0xFF800000> : vector<8xf32>
    %41 = vector.multi_reduction <maximumf>, %40, %cst_15 [1] : vector<8x8xf32> to vector<8xf32>
    %42 = vector.shape_cast %41 : vector<8xf32> to vector<8x1xf32>
    %43 = vector.broadcast %42 : vector<8x1xf32> to vector<8x8xf32>
    %44 = arith.subf %40, %43 : vector<8x8xf32>
    %45 = math.exp %44 : vector<8x8xf32>
    %cst_16 = arith.constant dense<0.000000e+00> : vector<8xf32>
    %46 = vector.multi_reduction <add>, %45, %cst_16 [1] : vector<8x8xf32> to vector<8xf32>
    %47 = vector.shape_cast %46 : vector<8xf32> to vector<8x1xf32>
    %48 = tpu.reciprocal %47 {approx = true} : vector<8x1xf32> -> vector<8x1xf32>
    %49 = vector.broadcast %48 : vector<8x1xf32> to vector<8x8xf32>
    %50 = arith.mulf %45, %49 : vector<8x8xf32>
    %51 = arith.truncf %50 : vector<8x8xf32> to vector<8x8xbf16>
    %cst_17 = arith.constant dense<0.000000e+00> : vector<8x8xf32>
    %52 = tpu.matmul %51, %20, %cst_17 {dimension_numbers = #tpu.dot_dimension_numbers<[1], [0], [0], [1], [0, 0, 1, 1], [], []>} : vector<8x8xbf16>, vector<8x8xbf16>, vector<8x8xf32> -> vector<8x8xf32>
    %53 = arith.truncf %52 : vector<8x8xf32> to vector<8x8xbf16>
    %c0_18 = arith.constant 0 : index
    %c0_19 = arith.constant 0 : index
    %54 = vector.load %arg8[%c0_18, %c0_19] : memref<8x32xbf16, #tpu.memory_space<vmem>>, vector<8x8xbf16>
    tpu.vector_store %arg8[%c0_18, %c0_19], %53 {strides = array<i32>} : memref<8x32xbf16, #tpu.memory_space<vmem>>, vector<8x8xbf16>,
    %55 = vector.extract_strided_slice %4 {offsets = [0, 8], sizes = [8, 8], strides = [1, 1]} : vector<8x64xf32> to vector<8x8xf32>
    %56 = vector.extract_strided_slice %55 {offsets = [0, 4], sizes = [8, 4], strides = [1, 1]} : vector<8x8xf32> to vector<8x4xf32>
    %57 = vector.extract_strided_slice %55 {offsets = [0, 0], sizes = [8, 4], strides = [1, 1]} : vector<8x8xf32> to vector<8x4xf32>
    %58 = tpu.concatenate %56, %57 in 1 : vector<8x4xf32>, vector<8x4xf32> -> vector<8x8xf32>
    %59 = arith.mulf %55, %6 : vector<8x8xf32>
    %60 = arith.mulf %58, %8 : vector<8x8xf32>
    %61 = arith.addf %59, %60 : vector<8x8xf32>
    %62 = arith.truncf %61 : vector<8x8xf32> to vector<8x8xbf16>
    %cst_20 = arith.constant dense<0.000000e+00> : vector<8x8xf32>
    %63 = tpu.matmul %62, %19, %cst_20 {dimension_numbers = #tpu.dot_dimension_numbers<[1], [1], [0], [0], [0, 0, 1, 0], [], []>} : vector<8x8xbf16>, vector<8x8xbf16>, vector<8x8xf32> -> vector<8x8xf32>
    %64 = arith.addf %63, %10 : vector<8x8xf32>
    %cst_21 = arith.constant dense<0xFF800000> : vector<8xf32>
    %65 = vector.multi_reduction <maximumf>, %64, %cst_21 [1] : vector<8x8xf32> to vector<8xf32>
    %66 = vector.shape_cast %65 : vector<8xf32> to vector<8x1xf32>
    %67 = vector.broadcast %66 : vector<8x1xf32> to vector<8x8xf32>
    %68 = arith.subf %64, %67 : vector<8x8xf32>
    %69 = math.exp %68 : vector<8x8xf32>
    %cst_22 = arith.constant dense<0.000000e+00> : vector<8xf32>
    %70 = vector.multi_reduction <add>, %69, %cst_22 [1] : vector<8x8xf32> to vector<8xf32>
    %71 = vector.shape_cast %70 : vector<8xf32> to vector<8x1xf32>
    %72 = tpu.reciprocal %71 {approx = true} : vector<8x1xf32> -> vector<8x1xf32>
    %73 = vector.broadcast %72 : vector<8x1xf32> to vector<8x8xf32>
    %74 = arith.mulf %69, %73 : vector<8x8xf32>
    %75 = arith.truncf %74 : vector<8x8xf32> to vector<8x8xbf16>
    %cst_23 = arith.constant dense<0.000000e+00> : vector<8x8xf32>
    %76 = tpu.matmul %75, %20, %cst_23 {dimension_numbers = #tpu.dot_dimension_numbers<[1], [0], [0], [1], [0, 0, 1, 1], [], []>} : vector<8x8xbf16>, vector<8x8xbf16>, vector<8x8xf32> -> vector<8x8xf32>
    %77 = arith.truncf %76 : vector<8x8xf32> to vector<8x8xbf16>
    %c0_24 = arith.constant 0 : index
    %c8 = arith.constant 8 : index
    %78 = vector.load %arg8[%c0_24, %c8] : memref<8x32xbf16, #tpu.memory_space<vmem>>, vector<8x8xbf16>
    tpu.vector_store %arg8[%c0_24, %c8], %77 {strides = array<i32>} : memref<8x32xbf16, #tpu.memory_space<vmem>>, vector<8x8xbf16>,
    %79 = vector.extract_strided_slice %4 {offsets = [0, 16], sizes = [8, 8], strides = [1, 1]} : vector<8x64xf32> to vector<8x8xf32>
    %80 = vector.extract_strided_slice %79 {offsets = [0, 4], sizes = [8, 4], strides = [1, 1]} : vector<8x8xf32> to vector<8x4xf32>
    %81 = vector.extract_strided_slice %79 {offsets = [0, 0], sizes = [8, 4], strides = [1, 1]} : vector<8x8xf32> to vector<8x4xf32>
    %82 = tpu.concatenate %80, %81 in 1 : vector<8x4xf32>, vector<8x4xf32> -> vector<8x8xf32>
    %83 = arith.mulf %79, %6 : vector<8x8xf32>
    %84 = arith.mulf %82, %8 : vector<8x8xf32>
    %85 = arith.addf %83, %84 : vector<8x8xf32>
    %86 = arith.truncf %85 : vector<8x8xf32> to vector<8x8xbf16>
    %cst_25 = arith.constant dense<0.000000e+00> : vector<8x8xf32>
    %87 = tpu.matmul %86, %29, %cst_25 {dimension_numbers = #tpu.dot_dimension_numbers<[1], [1], [0], [0], [0, 0, 1, 0], [], []>} : vector<8x8xbf16>, vector<8x8xbf16>, vector<8x8xf32> -> vector<8x8xf32>
    %88 = arith.addf %87, %10 : vector<8x8xf32>
    %cst_26 = arith.constant dense<0xFF800000> : vector<8xf32>
    %89 = vector.multi_reduction <maximumf>, %88, %cst_26 [1] : vector<8x8xf32> to vector<8xf32>
    %90 = vector.shape_cast %89 : vector<8xf32> to vector<8x1xf32>
    %91 = vector.broadcast %90 : vector<8x1xf32> to vector<8x8xf32>
    %92 = arith.subf %88, %91 : vector<8x8xf32>
    %93 = math.exp %92 : vector<8x8xf32>
    %cst_27 = arith.constant dense<0.000000e+00> : vector<8xf32>
    %94 = vector.multi_reduction <add>, %93, %cst_27 [1] : vector<8x8xf32> to vector<8xf32>
    %95 = vector.shape_cast %94 : vector<8xf32> to vector<8x1xf32>
    %96 = tpu.reciprocal %95 {approx = true} : vector<8x1xf32> -> vector<8x1xf32>
    %97 = vector.broadcast %96 : vector<8x1xf32> to vector<8x8xf32>
    %98 = arith.mulf %93, %97 : vector<8x8xf32>
    %99 = arith.truncf %98 : vector<8x8xf32> to vector<8x8xbf16>
    %cst_28 = arith.constant dense<0.000000e+00> : vector<8x8xf32>
    %100 = tpu.matmul %99, %30, %cst_28 {dimension_numbers = #tpu.dot_dimension_numbers<[1], [0], [0], [1], [0, 0, 1, 1], [], []>} : vector<8x8xbf16>, vector<8x8xbf16>, vector<8x8xf32> -> vector<8x8xf32>
    %101 = arith.truncf %100 : vector<8x8xf32> to vector<8x8xbf16>
    %c0_29 = arith.constant 0 : index
    %c16 = arith.constant 16 : index
    %102 = vector.load %arg8[%c0_29, %c16] : memref<8x32xbf16, #tpu.memory_space<vmem>>, vector<8x8xbf16>
    tpu.vector_store %arg8[%c0_29, %c16], %101 {strides = array<i32>} : memref<8x32xbf16, #tpu.memory_space<vmem>>, vector<8x8xbf16>,
    %103 = vector.extract_strided_slice %4 {offsets = [0, 24], sizes = [8, 8], strides = [1, 1]} : vector<8x64xf32> to vector<8x8xf32>
    %104 = vector.extract_strided_slice %103 {offsets = [0, 4], sizes = [8, 4], strides = [1, 1]} : vector<8x8xf32> to vector<8x4xf32>
    %105 = vector.extract_strided_slice %103 {offsets = [0, 0], sizes = [8, 4], strides = [1, 1]} : vector<8x8xf32> to vector<8x4xf32>
    %106 = tpu.concatenate %104, %105 in 1 : vector<8x4xf32>, vector<8x4xf32> -> vector<8x8xf32>
    %107 = arith.mulf %103, %6 : vector<8x8xf32>
    %108 = arith.mulf %106, %8 : vector<8x8xf32>
    %109 = arith.addf %107, %108 : vector<8x8xf32>
    %110 = arith.truncf %109 : vector<8x8xf32> to vector<8x8xbf16>
    %cst_30 = arith.constant dense<0.000000e+00> : vector<8x8xf32>
    %111 = tpu.matmul %110, %29, %cst_30 {dimension_numbers = #tpu.dot_dimension_numbers<[1], [1], [0], [0], [0, 0, 1, 0], [], []>} : vector<8x8xbf16>, vector<8x8xbf16>, vector<8x8xf32> -> vector<8x8xf32>
    %112 = arith.addf %111, %10 : vector<8x8xf32>
    %cst_31 = arith.constant dense<0xFF800000> : vector<8xf32>
    %113 = vector.multi_reduction <maximumf>, %112, %cst_31 [1] : vector<8x8xf32> to vector<8xf32>
    %114 = vector.shape_cast %113 : vector<8xf32> to vector<8x1xf32>
    %115 = vector.broadcast %114 : vector<8x1xf32> to vector<8x8xf32>
    %116 = arith.subf %112, %115 : vector<8x8xf32>
    %117 = math.exp %116 : vector<8x8xf32>
    %cst_32 = arith.constant dense<0.000000e+00> : vector<8xf32>
    %118 = vector.multi_reduction <add>, %117, %cst_32 [1] : vector<8x8xf32> to vector<8xf32>
    %119 = vector.shape_cast %118 : vector<8xf32> to vector<8x1xf32>
    %120 = tpu.reciprocal %119 {approx = true} : vector<8x1xf32> -> vector<8x1xf32>
    %121 = vector.broadcast %120 : vector<8x1xf32> to vector<8x8xf32>
    %122 = arith.mulf %117, %121 : vector<8x8xf32>
    %123 = arith.truncf %122 : vector<8x8xf32> to vector<8x8xbf16>
    %cst_33 = arith.constant dense<0.000000e+00> : vector<8x8xf32>
    %124 = tpu.matmul %123, %30, %cst_33 {dimension_numbers = #tpu.dot_dimension_numbers<[1], [0], [0], [1], [0, 0, 1, 1], [], []>} : vector<8x8xbf16>, vector<8x8xbf16>, vector<8x8xf32> -> vector<8x8xf32>
    %125 = arith.truncf %124 : vector<8x8xf32> to vector<8x8xbf16>
    %c0_34 = arith.constant 0 : index
    %c24 = arith.constant 24 : index
    %126 = vector.load %arg8[%c0_34, %c24] : memref<8x32xbf16, #tpu.memory_space<vmem>>, vector<8x8xbf16>
    tpu.vector_store %arg8[%c0_34, %c24], %125 {strides = array<i32>} : memref<8x32xbf16, #tpu.memory_space<vmem>>, vector<8x8xbf16>,
    %c0_35 = arith.constant 0 : index
    %c0_36 = arith.constant 0 : index
    %127 = vector.load %arg8[%c0_35, %c0_36] : memref<8x32xbf16, #tpu.memory_space<vmem>>, vector<8x32xbf16>
    %c0_37 = arith.constant 0 : index
    %c0_38 = arith.constant 0 : index
    %128 = vector.load %arg6[%c0_37, %c0_38] : memref<32x32xbf16, #tpu.memory_space<vmem>>, vector<32x32xbf16>
    %cst_39 = arith.constant dense<0.000000e+00> : vector<8x32xf32>
    %129 = tpu.matmul %127, %128, %cst_39 {dimension_numbers = #tpu.dot_dimension_numbers<[1], [0], [0], [1], [0, 0, 1, 1], [], []>} : vector<8x32xbf16>, vector<32x32xbf16>, vector<8x32xf32> -> vector<8x32xf32>
    %c0_40 = arith.constant 0 : index
    %c0_41 = arith.constant 0 : index
    %c0_42 = arith.constant 0 : index
    %130 = vector.load %arg7[%c0_40, %c0_41, %c0_42] : memref<1x8x32xf32, #tpu.memory_space<vmem>>, vector<1x8x32xf32>
    %131 = vector.shape_cast %130 : vector<1x8x32xf32> to vector<8x32xf32>
    %132 = vector.shape_cast %129 : vector<8x32xf32> to vector<1x8x32xf32>
    tpu.vector_store %arg7[%c0_40, %c0_41, %c0_42], %132 {strides = array<i32>} : memref<1x8x32xf32, #tpu.memory_space<vmem>>, vector<1x8x32xf32>,
    return
  }
  func.func @transform_0(%arg0: i32) -> (i32, i32, i32) {
    %c0_i32 = arith.constant 0 : i32
    %c0_i32_0 = arith.constant 0 : i32
    %c0_i32_1 = arith.constant 0 : i32
    return %arg0, %c0_i32, %c0_i32_0 : i32, i32, i32
  }
  func.func @transform_1(%arg0: i32) -> (i32, i32) {
    %c0_i32 = arith.constant 0 : i32
    %c0_i32_0 = arith.constant 0 : i32
    %c0_i32_1 = arith.constant 0 : i32
    return %c0_i32, %c0_i32_0 : i32, i32
  }
  func.func @transform_2(%arg0: i32) -> (i32, i32, i32) {
    %c0_i32 = arith.constant 0 : i32
    %c0_i32_0 = arith.constant 0 : i32
    %c0_i32_1 = arith.constant 0 : i32
    return %arg0, %c0_i32, %c0_i32_0 : i32, i32, i32
  }
  func.func @transform_3(%arg0: i32) -> (i32, i32, i32) {
    %c0_i32 = arith.constant 0 : i32
    %c0_i32_0 = arith.constant 0 : i32
    %c0_i32_1 = arith.constant 0 : i32
    return %arg0, %c0_i32, %c0_i32_0 : i32, i32, i32
  }
  func.func @transform_4(%arg0: i32) -> (i32, i32, i32, i32) {
    %c0_i32 = arith.constant 0 : i32
    %c0_i32_0 = arith.constant 0 : i32
    %c0_i32_1 = arith.constant 0 : i32
    %c0_i32_2 = arith.constant 0 : i32
    return %arg0, %c0_i32, %c0_i32_0, %c0_i32_1 : i32, i32, i32, i32
  }
  func.func @transform_5(%arg0: i32) -> (i32, i32) {
    %c0_i32 = arith.constant 0 : i32
    %c0_i32_0 = arith.constant 0 : i32
    %c0_i32_1 = arith.constant 0 : i32
    return %c0_i32, %c0_i32_0 : i32, i32
  }
  func.func @transform_6(%arg0: i32) -> (i32, i32, i32) {
    %c0_i32 = arith.constant 0 : i32
    %c0_i32_0 = arith.constant 0 : i32
    %c0_i32_1 = arith.constant 0 : i32
    return %arg0, %c0_i32, %c0_i32_0 : i32, i32, i32
  }
}

</mosaic_0001>

<bundles_post_ra>
// kernel: tpu_custom_call.1
= control target key start
LH: loop header
LB: loop body
LE: loop exit
PB: predicated region body
PF: predicated region fallthrough
CT: control target
= control target key end

     0   :  { %s2152_s0 = inlined_call_operand.hbm [shape: f32[2,8,32], index: 0, kind: input, shape index: {}]   ;;  %s2153_s1 = inlined_call_operand.hbm [shape: bf16[32,64], index: 1, kind: input, shape index: {}]   ;;  %s2154_s2 = inlined_call_operand.hbm [shape: f32[2,8,8], index: 2, kind: input, shape index: {}]   ;;  %s2155_s3 = inlined_call_operand.hbm [shape: f32[2,8,8], index: 3, kind: input, shape index: {}]   ;;  %s2156_s4 = inlined_call_operand.hbm [shape: f32[2,1,8,8], index: 4, kind: input, shape index: {}]   ;;  %s2157_s5 = inlined_call_operand.vmem [shape: bf16[32,32], index: 5, kind: input, shape index: {}]   ;;  %s2158_s6 = inlined_call_operand.hbm [shape: f32[2,8,32], index: 6, kind: output, shape index: {}]  }
   0x1   :  { %2167 = sst [smem:[#allocation16_spill]] %s2152_s0 }
   0x2   :  { %2168 = sst [smem:[#allocation17_spill]] %s2154_s2 }
   0x3   :  { %2169 = sst [smem:[#allocation18_spill]] %s2155_s3 }
   0x4   :  { %11 = vsyncpa [#allocation4], 0 }
   0x5   :  { %13 = vsyncpa [#allocation4 + $0x1], 0 }
   0x6   :  { %14 = vsyncpa [#allocation7], 0 }
   0x7   :  { %15 = vsyncpa [#allocation5], 0 }
   0x8   :  { %17 = vsyncpa [#allocation5 + $0x1], 0  ;;  %s1743_s21 = smov 0   ;;  %s1745_s22 = smov 0  }
   0x9   :  { %s1747_s23 = smov 0   ;;  %s1749_s24 = smov 0  }
   0xa LB: > { %s1764_s25 = sadd.s32 1, %s1677_s24   ;;  %s30_s26 = sadd.s32 1, %s1673_s23  ;;  %s1677_s24 = sphi %s1749_s24, %s2195_s24   ;;  %s1673_s23 = sphi %s1747_s23, %s2194_s23   ;;  %s1669_s22 = sphi %s1745_s22, %s2193_s22   ;;  %s1665_s21 = sphi %s1743_s21, %s2192_s21  }
   0xb   : > { %s27_s27 = ssub.s32 %s1677_s24, %s1764_s25  ;;  %p2159_p0 = scmp.ne.s32.totalorder %s1673_s23, %s1669_s22 }
   0xc   : > { %p28_p1 = scmp.eq.s32.totalorder %s27_s27, 0  ;;  %p38_p2 = scmp.eq.s32.totalorder %s1677_s24, 0 }
   0xd   : > { %p1376_p4 = scmp.lt.s32.totalorder %s1677_s24, 2  ;;  %s229_s29 = sand.u32 1, %s1677_s24  }
   0xe   : > { %s1775_s28 = scalar_select %p28_p1, %s1673_s23, %s30_s26  }
   0xf   : > { %p39_p5 = por %p38_p2, %p2159_p0  ;;  %s231_s30 = sand.u32 1, %s1673_s23  }
  0x10   : > { %s1782_s7 = sshll.u32 %s231_s30, 3  ;;  %s1785_s8 = sshll.u32 %s1677_s24, 7 }
  0x11   : > { %s2170_s0 = sld [smem:[#allocation16_spill]]  ;;  %s233_s12 = scalar_lea.vmem [#allocation3], %s1782_s7 }
  0x12   : > { %s240_s13 = sshll.u32 %s233_s12, 4  ;;  %p1794_p6 = pnand %p1376_p4, %p39_p5  ;;  %s1798_s13 = int_to_ptr.vmem [resolvable:$true] %s240_s13 }
  0x13   : > { %s2172_s2 = sld [smem:[#allocation17_spill]]  ;;  %s1806_s18 = scalar_lea.sflag [#allocation4], %s229_s29 }
  0x14   : > { %s2171_s14 = scalar_select %p1794_p6, 1, 0 }
  0x15   : > { %p1812_p8 = pneg %p1794_p6 }
  0x17   : > { %s1791_s11 = scalar_lea.hbm %s2170_s0, %s1785_s8  ;;  %s1460_s30 = scalar_lea.hbm %s2170_s0, 256 }
  0x18   : > { %s1455_s19 = scalar_lea.hbm %s1791_s11, 128  ;;  %p1461_p11 = scmp.lt.u32.totalorder %s1791_s11, %s2170_s0 }
  0x19   : > { %s1804_s17 = scalar_lea.hbm %s2172_s2, %s1785_s8  ;;  %p1456_p7 = scmp.ne.s32.totalorder %s1791_s11, %s1455_s19 }
  0x1a   : > { %p1462_p12 = scmp.lt.u32.totalorder %s1460_s30, %s1455_s19  ;;  %p1464_p1 = scmp.lt.u32.totalorder %s1455_s19, %s1791_s11 }
  0x1b   : > { %p1458_p9 = pnand %p1812_p8, %p1456_p7 }
  0x1c   : > { %p1463_p13 = por %p1462_p12, %p1461_p11 }
  0x1d   : > { %p1459_p10 = pneg %p1458_p9 }
  0x1e   : > { %p1465_p2 = por %p1464_p1, %p1463_p13 }
  0x20   : > { %p1466_p4 = pnand %p1465_p2, %p1459_p10 }
  0x22   : > { %1469 = shalt.err (!%p1466_p4)
}
  0x23   : > { %s1470_s29 = scalar_lea.vmem %s1798_s13, 128  ;;  %s1679_s12 = smov [#allocation3]  }
  0x24   : > { %p1471_p5 = scmp.ne.s32.totalorder %s1798_s13, %s1470_s29  ;;  %s1475_s15 = sshll.u32 %s1679_s12, 4  ;;  %s1476_s15 = int_to_ptr.vmem [resolvable:$false] %s1475_s15 }
  0x25   : > { %s1477_s16 = scalar_lea.vmem %s1476_s15, 256  ;;  %p1478_p3 = scmp.lt.s32.totalorder %s1798_s13, %s1476_s15 }
  0x26   : > { %p1473_p7 = pnand %p1471_p5, %p1812_p8  ;;  %p1479_p0 = scmp.lt.s32.totalorder %s1477_s16, %s1470_s29 }
  0x28   : > { %p1474_p9 = pneg %p1473_p7  ;;  %p1480_p11 = por %p1479_p0, %p1478_p3 }
  0x2a   : > { %p1481_p12 = pnand %p1480_p11, %p1474_p9 }
  0x2c   : > { %1484 = shalt.err (!%p1481_p12)
}
  0x2d   : > { %1361 = dma.hbm_to_vmem [thread:$0]  (!%p1794_p6), %s1791_s11, 128, %s1798_s13, %s1806_s18  }
  0x2e   : > { %s251_s19 = scalar_lea.vmem [#allocation8], %s1782_s7  ;;  %s2174_s3 = sld [smem:[#allocation18_spill]] }
  0x2f   : > { %s258_s26 = sshll.u32 %s251_s19, 4  ;;  %s1485_s10 = scalar_lea.hbm %s1804_s17, 128  ;;  %s259_s26 = int_to_ptr.vmem [resolvable:$true] %s258_s26 }
  0x30   : > { %p1486_p0 = scmp.ne.s32.totalorder %s1804_s17, %s1485_s10  ;;  %s1490_s15 = scalar_lea.hbm %s2172_s2, 256 }
  0x31   : > { %p1491_p13 = scmp.lt.u32.totalorder %s1804_s17, %s2172_s2  ;;  %p1492_p1 = scmp.lt.u32.totalorder %s1490_s15, %s1485_s10 }
  0x32   : > { %p1488_p3 = pnand %p1486_p0, %p1812_p8  ;;  %p1494_p4 = scmp.lt.u32.totalorder %s1485_s10, %s1804_s17 }
  0x33   : > { %p1493_p2 = por %p1492_p1, %p1491_p13 }
  0x34   : > { %s1841_s9 = scalar_lea.hbm %s2174_s3, %s1785_s8  ;;  %p1489_p10 = pneg %p1488_p3 }
  0x35   : > { %p1495_p5 = por %p1494_p4, %p1493_p2 }
  0x37   : > { %p1496_p7 = pnand %p1495_p5, %p1489_p10 }
  0x39   : > { %1499 = shalt.err (!%p1496_p7)
}
  0x3a   : > { %s1500_s11 = scalar_lea.vmem %s259_s26, 128  ;;  %s1680_s13 = smov [#allocation8]  }
  0x3b   : > { %p1501_p9 = scmp.ne.s32.totalorder %s259_s26, %s1500_s11  ;;  %s1505_s19 = sshll.u32 %s1680_s13, 4  ;;  %s1506_s19 = int_to_ptr.vmem [resolvable:$false] %s1505_s19 }
  0x3c   : > { %s1507_s27 = scalar_lea.vmem %s1506_s19, 256  ;;  %p1508_p0 = scmp.lt.s32.totalorder %s259_s26, %s1506_s19 }
  0x3d   : > { %p1503_p11 = pnand %p1501_p9, %p1812_p8  ;;  %p1509_p3 = scmp.lt.s32.totalorder %s1507_s27, %s1500_s11 }
  0x3f   : > { %p1504_p12 = pneg %p1503_p11  ;;  %p1510_p6 = por %p1509_p3, %p1508_p0 }
  0x41   : > { %p1511_p1 = pnand %p1510_p6, %p1504_p12 }
  0x43   : > { %1514 = shalt.err (!%p1511_p1)
}
  0x44   : > { %p2175_p13 = scmp.ne.s32.totalorder %s2171_s14, 0  ;;  %s269_s0 = scalar_lea.vmem [#allocation9], %s1782_s7 }
  0x45   : > { %s276_s30 = sshll.u32 %s269_s0, 4  ;;  %s1515_s10 = scalar_lea.hbm %s1841_s9, 128  ;;  %s277_s30 = int_to_ptr.vmem [resolvable:$true] %s276_s30 }
  0x46   : > { %1364 = dma.hbm_to_vmem [thread:$0]  (!%p2175_p13), %s1804_s17, 128, %s259_s26, %s1806_s18  }
  0x47   : > { %p1516_p10 = scmp.ne.s32.totalorder %s1841_s9, %s1515_s10  ;;  %s1520_s15 = scalar_lea.hbm %s2174_s3, 256 }
  0x48   : > { %p1521_p4 = scmp.lt.u32.totalorder %s1841_s9, %s2174_s3  ;;  %p1522_p5 = scmp.lt.u32.totalorder %s1520_s15, %s1515_s10 }
  0x49   : > { %p1518_p2 = pnand %p1516_p10, %p1812_p8  ;;  %p1524_p9 = scmp.lt.u32.totalorder %s1515_s10, %s1841_s9 }
  0x4a   : > { %p1523_p7 = por %p1522_p5, %p1521_p4 }
  0x4b   : > { %p1519_p6 = pneg %p1518_p2 }
  0x4c   : > { %p1525_p11 = por %p1524_p9, %p1523_p7 }
  0x4e   : > { %p1526_p12 = pnand %p1525_p11, %p1519_p6 }
  0x50   : > { %1529 = shalt.err (!%p1526_p12)
}
  0x51   : > { %s1530_s17 = scalar_lea.vmem %s277_s30, 128  ;;  %s1681_s26 = smov [#allocation9]  }
  0x52   : > { %p1531_p0 = scmp.ne.s32.totalorder %s277_s30, %s1530_s17  ;;  %s1535_s13 = sshll.u32 %s1681_s26, 4  ;;  %s1536_s13 = int_to_ptr.vmem [resolvable:$false] %s1535_s13 }
  0x53   : > { %s1537_s19 = scalar_lea.vmem %s1536_s13, 256  ;;  %p1538_p10 = scmp.lt.s32.totalorder %s277_s30, %s1536_s13 }
  0x54   : > { %p1533_p3 = pnand %p1531_p0, %p1812_p8  ;;  %p1539_p2 = scmp.lt.s32.totalorder %s1537_s19, %s1530_s17 }
  0x56   : > { %p1534_p1 = pneg %p1533_p3  ;;  %p1540_p13 = por %p1539_p2, %p1538_p10 }
  0x58   : > { %p1541_p4 = pnand %p1540_p13, %p1534_p1 }
  0x5a   : > { %1544 = shalt.err (!%p1541_p4)
}
  0x5b   : > { %p2176_p5 = scmp.ne.s32.totalorder %s2171_s14, 0  ;;  %s1881_s27 = sadd.s32 4294967295, %s1677_s24  }
  0x5c   : > { %s1211_s0 = sadd.s32 4294967294, %s1677_s24   ;;  %p43_p13 = scmp.ne.s32.totalorder %s1669_s22, %s1665_s21 }
  0x5d   : > { %1367 = dma.hbm_to_vmem [thread:$0]  (!%p2176_p5), %s1841_s9, 128, %s277_s30, %s1806_s18  }
  0x5e   : > { %p2162_p6 = scmp.eq.s32.totalorder %s1881_s27, 0  ;;  %p187_p7 = scmp.eq.s32.totalorder %s1881_s27, 1 }
  0x5f   : > { %p193_p9 = scmp.eq.s32.totalorder %s1211_s0, 1  ;;  %p1212_p12 = scmp.ge.s32.totalorder %s1677_s24, 1 }
  0x60   : > { %p1890_p11 = por %p2162_p6, %p43_p13  ;;  %p2178_p0 = scmp.ne.s32.totalorder %s1673_s23, %s1669_s22 }
  0x61   : > { %p1902_p1 = por %p193_p9, %p43_p13  ;;  %p200_p10 = scmp.lt.s32.totalorder %s1677_s24, 3 }
  0x62   : > { %s2177_s10 = scalar_select %p1890_p11, 1, 0 }
  0x63   : > { %p1898_p3 = por %p187_p7, %p2178_p0  ;;  %p1907_p2 = pnand %p1212_p12, %p200_p10 }
  0x64   : > { %s2180_s30 = scalar_select %p1902_p1, 1, 0 }
  0x65   : > { %s2179_s9 = scalar_select %p1898_p3, 1, 0 }
  0x66   : > { %s2181_s29 = scalar_select %p1907_p2, 1, 0 }
  0x67   : > { %s1682_s12 = smov [#allocation6]   ;;  %p1354_p4 = pneg %p1907_p2 }
  0x68   : > { %s212_s15 = sshll.u32 %s1682_s12, 4  ;;  %s1919_s17 = scalar_lea.hbm %s2156_s4, %s1785_s8  ;;  %s1911_s15 = int_to_ptr.vmem [resolvable:$true] %s212_s15 }
  0x69   : > { %s287_s26 = scalar_lea.vmem [#allocation10], %s1782_s7  ;;  %p1924_p13 = pnand %p1354_p4, %p2162_p6 }
  0x6a   : > { %s294_s13 = sshll.u32 %s287_s26, 4  ;;  %s1545_s0 = scalar_lea.hbm %s1919_s17, 128  ;;  %s295_s13 = int_to_ptr.vmem [resolvable:$true] %s294_s13 }
  0x6b   : > { %s2182_s19 = scalar_select %p1924_p13, 1, 0 }
  0x6c   : > { %p1546_p7 = scmp.ne.s32.totalorder %s1919_s17, %s1545_s0  ;;  %s1550_s16 = scalar_lea.hbm %s2156_s4, 256 }
  0x6d   : > { %p1551_p0 = scmp.lt.u32.totalorder %s1919_s17, %s2156_s4  ;;  %p1552_p10 = scmp.lt.u32.totalorder %s1550_s16, %s1545_s0 }
  0x6e   : > { %p1548_p9 = pnand %p1546_p7, %p1812_p8  ;;  %p1554_p4 = scmp.lt.u32.totalorder %s1545_s0, %s1919_s17 }
  0x6f   : > { %p1553_p1 = por %p1552_p10, %p1551_p0 }
  0x70   : > { %p1549_p12 = pneg %p1548_p9 }
  0x71   : > { %p1555_p6 = por %p1554_p4, %p1553_p1 }
  0x73   : > { %p1556_p3 = pnand %p1555_p6, %p1549_p12 }
  0x75   : > { %1559 = shalt.err (!%p1556_p3)
}
  0x76   : > { %s1560_s7 = scalar_lea.vmem %s295_s13, 128  ;;  %s1683_s26 = smov [#allocation10]  }
  0x77   : > { %p1561_p11 = scmp.ne.s32.totalorder %s295_s13, %s1560_s7  ;;  %s1565_s3 = sshll.u32 %s1683_s26, 4  ;;  %s1566_s3 = int_to_ptr.vmem [resolvable:$false] %s1565_s3 }
  0x78   : > { %s1567_s12 = scalar_lea.vmem %s1566_s3, 256  ;;  %p1568_p2 = scmp.lt.s32.totalorder %s295_s13, %s1566_s3 }
  0x79   : > { %p1563_p7 = pnand %p1561_p11, %p1812_p8  ;;  %p1569_p13 = scmp.lt.s32.totalorder %s1567_s12, %s1560_s7 }
  0x7b   : > { %p1564_p9 = pneg %p1563_p7  ;;  %p1570_p5 = por %p1569_p13, %p1568_p2 }
  0x7d   : > { %p1571_p0 = pnand %p1570_p5, %p1564_p9 }
  0x7f   : > { %1574 = shalt.err (!%p1571_p0)
}
  0x80   : > { %p2183_p10 = scmp.ne.s32.totalorder %s2171_s14, 0  ;;  %s1575_s20 = scalar_lea.hbm %s2153_s1, 256 }
  0x81   : > { %p1576_p8 = scmp.ne.s32.totalorder %s2153_s1, %s1575_s20  ;;  %p2184_p6 = scmp.ne.s32.totalorder %s2182_s19, 0 }
  0x82   : > { %1370 = dma.hbm_to_vmem [thread:$0]  (!%p2183_p10), %s1919_s17, 128, %s295_s13, %s1806_s18  }
  0x83   : > { %p1577_p11 = pneg %p2184_p6  ;;  %p1582_p5 = scmp.lt.u32.totalorder %s1575_s20, %s2153_s1 }
  0x85   : > { %p1578_p3 = pnand %p1577_p11, %p1576_p8 }
  0x87   : > { %p1579_p1 = pneg %p1578_p3 }
  0x89   : > { %p1584_p2 = pnand %p1582_p5, %p1579_p1 }
  0x8b   : > { %1587 = shalt.err (!%p1584_p2)
}
  0x8c   : > { %s1588_s14 = scalar_lea.vmem %s1911_s15, 256  ;;  %p1596_p7 = scmp.lt.s32.totalorder %s1911_s15, %s1911_s15 }
  0x8d   : > { %p1589_p13 = scmp.ne.s32.totalorder %s1911_s15, %s1588_s14  ;;  %p1597_p9 = scmp.lt.s32.totalorder %s1588_s14, %s1588_s14 }
  0x8f   : > { %p1591_p12 = pnand %p1589_p13, %p1577_p11  ;;  %p1598_p0 = por %p1597_p9, %p1596_p7 }
  0x91   : > { %p1592_p4 = pneg %p1591_p12 }
  0x93   : > { %p1599_p10 = pnand %p1598_p0, %p1592_p4 }
  0x95   : > { %1602 = shalt.err (!%p1599_p10)
}
  0x96   : > { %s1684_s18 = smov 64   ;;  %s1685_s17 = smov 4  }
  0x97   : > { %1357 = dma.hbm_to_vmem [thread:$0]  (!%p2184_p6), %s2153_s1, 256, %s1911_s15, [#allocation7], %s1684_s18, %s1684_s18, %s1685_s17  }
  0x98   : > { %p2185_p8 = scmp.ne.s32.totalorder %s2181_s29, 0 }
  0x99   : > { %s305_s26 = sand.u32 (!%p2185_p8), 1, %s1881_s27   ;;  %s307_s12 = sand.u32 (!%p2185_p8), 1, %s1669_s22  }
  0x9a   : > { %303 = sbr.rel (%p2185_p8) target bundleno = 1881 (0x759), region = 44  ;;  %s1973_s2 = sshll.u32 (!%p2185_p8), %s307_s12, 3 }
  0x9b   : > { %s306_s0 = scalar_lea.sflag (!%p2185_p8), [#allocation4], %s305_s26  ;;  %s309_s20 = scalar_lea.vmem (!%p2185_p8), [#allocation3], %s1973_s2 }
  0x9c   : > { %p2186_p11 = scmp.ne.s32.totalorder (!%p2185_p8), %s2177_s10, 0 }
  0xa1   : > { %1648 = dma.done.wait (%p2186_p11), %s306_s0, 128  }
  0xa2   : > { %1650 = vsyncadd (%p2186_p11), %s306_s0, 4294967168  ;;  %p2187_p6 = scmp.eq.s32.totalorder %s1881_s27, 0 }
  0xa4   : > { %1652 = dma.done.wait (%p2187_p6), [#allocation7], 256   ;;  %p2188_p3 = pmov %p2187_p6 }
  0xa5   : > { %s322_s29 = scalar_lea.vmem [#allocation8], %s1973_s2 }
  0xa6   : > { %1654 = vsyncadd (%p2188_p3), [#allocation7], 4294967040 }
  0xa7   : > { %1656 = dma.done.wait (%p2186_p11), %s306_s0, 384  }
  0xa8   : > { %1658 = vsyncadd (%p2186_p11), %s306_s0, 4294966912  ;;  %v1686_v0 = vmov 0.0   ;;  %vm1687_vm0 = vmmov 0   ;;  %v1435_v1 = vld [vmem:[#allocation6] sm:$0xff]   ;;  %v1436_v2 = vld [vmem:[#allocation6 + $0x8] sm:$0xff]   ;;  %vm403_vm1 = vcmask 261120  }
  0xa9   : > { %1276 = vmatprep.subr.bf16.mxu0 %v1686_v0  ;;  %1280 = vmatprep.mubr.msk.bf16.mxu0 %vm1687_vm0, %v1686_v0  ;;  %v385_v3 = vld [vmem:[%s309_s20] sm:$0xff]  ;;  %s1688_s10 = smov 84   ;;  %s1689_s15 = smov 92   ;;  %vm457_vm2 = vcmask 31744   ;;  %vm501_vm3 = vcmask 64512   ;;  %vm566_vm4 = vcmask 1043456  }
  0xaa   : > { %1284 = vmatprep.subr.bf16.mxu1 %v1686_v0  ;;  %1286 = vmatprep.mubr.msk.bf16.mxu1 %vm1687_vm0, %v1686_v0  ;;  %v386_v4 = vpack.c.bf16 %v385_v3, %v385_v3  ;;  %s1690_s19 = smov 124   ;;  %s1691_s8 = smov 100   ;;  %v2010_v9 = vld [vmem:[%s322_s29] sm:$0xff]  ;;  %vm611_vm5 = vcmask 60416   ;;  %vm736_vm6 = vcmask 126016   ;;  %vm872_vm7 = vcmask 191616  }
  0xab   : > { %1277 = vmatpush3.bf16.msra.mxu0 %v1435_v1  ;;  %s1692_s16 = smov 108   ;;  %s1693_s3 = smov 116   ;;  %vm994_vm8 = vcmask 257216  }
  0xac   : > { %1278 = vmatprep.subr.bf16.mxu0 %v1686_v0  ;;  %s1694_s11 = smov 32   ;;  %s1695_s14 = smov 40  }
  0xad   : > { %s331_s18 = scalar_lea.vmem [#allocation9], %s1973_s2  ;;  %s1696_s17 = smov 16  }
  0xae   : > { %v2015_v10 = vld [vmem:[%s331_s18] sm:$0xff]  ;;  %s1697_s13 = smov 24   ;;  %s1698_s7 = smov 8  }
  0xaf   : > { %1279 = vmatpush3.bf16.msra.mxu0 %v1436_v2  ;;  %s1699_s26 = smov 4   ;;  %s1700_s0 = smov 88  }
  0xb0   : > { %1290 = vmatprep.subr.bf16.mxu0 %v1686_v0  ;;  %s1701_s20 = smov 96   ;;  %s1702_s29 = smov 120  }
  0xb1   : > { %p2189_p5 = scmp.ne.s32.totalorder %s2179_s9, 0 }
  0xb2   : > { %1281 = vmatmul.mubr.msk.bf16.vlgmr.msra.gmra.mrb[0].mxu0 %vm403_vm1, %v386_v4 }
  0xb3   : > { %1292 = vmatprep.mubr.msk.bf16.mxu0 %vm1687_vm0, %v1686_v0 }
 0x185   : > { %v2000_v5 = vpop.f32.mrb[0].mxu0 }
 0x186   : > { %472 = vrot.lane.b32.xlu1 %v2000_v5, %s1688_s10  ;;  %451 = vrot.lane.b32.xlu0 %v2000_v5, %s1689_s15  ;;  %v1282_v6 = vpop.f32.mrb[1].mxu0  ;;  %s1703_s10 = smov 112   ;;  %s1704_s15 = smov 104   ;;  %v494_v56 = vmul.f32 %v2010_v9, %v2000_v5 }
 0x187   : > { %v444_v7 = vpop.f32.mrb[2].mxu0 }
 0x188   : > { %v1283_v8 = vpop.f32.mrb[3].mxu0 }
 0x18a   : > { %487 = vrot.lane.b32.xlu1 %v2000_v5, %s1690_s19  ;;  %454 = vrot.lane.b32.xlu0 %v2000_v5, %s1691_s8  ;;  %s340_s19 = scalar_lea.vmem [#allocation10], %s1973_s2  ;;  %s1705_s8 = smov 80  }
 0x18b   : > { %v449_v2 = vld [vmem:[%s340_s19] sm:$0xff] }
 0x18e   : > { %738 = vrot.lane.b32.xlu1 %v2000_v5, %s1692_s16  ;;  %613 = vrot.lane.b32.xlu0 %v2000_v5, %s1693_s3  ;;  %s1706_s16 = smov 72  }
 0x192   : > { %460 = vrot.lane.b32.xlu0 %v2010_v9, %s1694_s11 }
 0x196   : > { %476 = vrot.lane.b32.xlu0 %v2010_v9, %s1695_s14 }
 0x1f8   : > { %v473_v11 = vpop.permute.xlu1 %472  ;;  %v452_v12 = vpop.permute.xlu0 %451 }
 0x1f9   : > { %v475_v13 = vsel %vm457_vm2, %v473_v11, %v452_v12 }
 0x1fa   : > { %v480_v14 = vmul.f32 %v475_v13, %v2015_v10 }
 0x1fc   : > { %482 = vrot.lane.b32.xlu0 %v480_v14, %s1695_s14  ;;  %v455_v15 = vpop.permute.xlu0 %454  ;;  %v488_v17 = vpop.permute.xlu1 %487 }
 0x1fd   : > { %v458_v16 = vsel %vm457_vm2, %v452_v12, %v455_v15 }
 0x1fe   : > { %v464_v18 = vmul.f32 %v458_v16, %v2015_v10 }
 0x200   : > { %742 = vrot.lane.b32.xlu0 %v2010_v9, %s1696_s17  ;;  %466 = vrot.lane.b32.xlu1 %v464_v18, %s1694_s11  ;;  %v614_v19 = vpop.permute.xlu0 %613  ;;  %v739_v21 = vpop.permute.xlu1 %738 }
 0x201   : > { %v616_v20 = vsel %vm457_vm2, %v614_v19, %v488_v17  ;;  %v741_v23 = vsel %vm457_vm2, %v739_v21, %v614_v19  ;;  %v874_v25 = vsel %vm457_vm2, %v455_v15, %v739_v21 }
 0x202   : > { %v621_v22 = vmul.f32 %v616_v20, %v2015_v10  ;;  %v746_v24 = vmul.f32 %v741_v23, %v2015_v10  ;;  %v879_v26 = vmul.f32 %v874_v25, %v2015_v10 }
 0x204   : > { %875 = vrot.lane.b32.xlu0 %v2010_v9, %s1697_s13  ;;  %617 = vrot.lane.b32.xlu1 %v2010_v9, %s1698_s7  ;;  %v461_v27 = vpop.permute.xlu0 %460 }
 0x205   : > { %v463_v32 = vmul.f32 %v461_v27, %v2000_v5 }
 0x208   : > { %623 = vrot.lane.b32.xlu1 %v621_v22, %s1698_s7  ;;  %v477_v28 = vpop.permute.xlu0 %476 }
 0x209   : > { %v479_v29 = vmul.f32 %v477_v28, %v2000_v5 }
 0x20c   : > { %748 = vrot.lane.b32.xlu1 %v746_v24, %s1696_s17 }
 0x210   : > { %881 = vrot.lane.b32.xlu1 %v879_v26, %s1697_s13 }
 0x214   : > { %490 = vrot.lane.b32.xlu1 %v2000_v5, %s1699_s26 }
 0x26e   : > { %v483_v30 = vpop.permute.xlu0 %482 }
 0x26f   : > { %v485_v31 = vadd.f32 %v483_v30, %v479_v29 }
 0x271   : > { %v486_v33 = vpack.c.bf16 %v485_v31, %v485_v31 }
 0x272   : > { %v467_v34 = vpop.permute.xlu1 %466  ;;  %v743_v38 = vpop.permute.xlu0 %742 }
 0x273   : > { %v469_v35 = vadd.f32 %v467_v34, %v463_v32  ;;  %757 = vrot.lane.b32.xlu1 %v486_v33, %s1700_s0  ;;  %v745_v42 = vmul.f32 %v743_v38, %v2000_v5 }
 0x275   : > { %v470_v36 = vpack.c.bf16 %v469_v35, %v469_v35 }
 0x276   : > { %v618_v37 = vpop.permute.xlu1 %617  ;;  %v876_v44 = vpop.permute.xlu0 %875 }
 0x277   : > { %499 = vrot.lane.b32.xlu0 %v470_v36, %s1701_s20  ;;  %v620_v39 = vmul.f32 %v618_v37, %v2000_v5  ;;  %v878_v47 = vmul.f32 %v876_v44, %v2000_v5 }
 0x27a   : > { %v624_v40 = vpop.permute.xlu1 %623 }
 0x27b   : > { %v626_v41 = vadd.f32 %v624_v40, %v620_v39 }
 0x27d   : > { %v627_v43 = vpack.c.bf16 %v626_v41, %v626_v41 }
 0x27e   : > { %v749_v45 = vpop.permute.xlu1 %748 }
 0x27f   : > { %v751_v46 = vadd.f32 %v749_v45, %v745_v42  ;;  %629 = vrot.lane.b32.xlu0 %v627_v43, %s1702_s29  ;;  %s1058_s29 = scalar_lea.sflag [#allocation5], %s307_s12 }
 0x281   : > { %v752_v48 = vpack.c.bf16 %v751_v46, %v751_v46 }
 0x282   : > { %v882_v49 = vpop.permute.xlu1 %881 }
 0x283   : > { %v884_v50 = vadd.f32 %v882_v49, %v878_v47  ;;  %754 = vrot.lane.b32.xlu0 %v752_v48, %s1703_s10  ;;  %v471_v48 = vpack.c.bf16 %v2000_v5, %v2000_v5 }
 0x285   : > { %v885_v51 = vpack.c.bf16 %v884_v50, %v884_v50 }
 0x286   : > { %v491_v52 = vpop.permute.xlu1 %490 }
 0x287   : > { %887 = vrot.lane.b32.xlu1 %v885_v51, %s1704_s15  ;;  %v493_v53 = vsel %vm457_vm2, %v488_v17, %v491_v52 }
 0x288   : > { %v495_v54 = vmul.f32 %v493_v53, %v2015_v10 }
 0x28a   : > { %v496_v58 = vadd.f32 %v495_v54, %v494_v56 }
 0x28c   : > { %v497_v59 = vpack.c.bf16 %v496_v58, %v496_v58 }
 0x2e5   : > { %v758_v60 = vpop.permute.xlu1 %757 }
 0x2e6   : > { %v763_v62 = vsel %vm501_vm3, %v758_v60, 0 }
 0x2e9   : > { %v500_v55 = vpop.permute.xlu0 %499 }
 0x2ea   : > { %v506_v57 = vsel %vm501_vm3, %v500_v55, 0 }
 0x2eb   : > { %1285 = vmatpush3.bf16.xpose.msra.mxu1 %v506_v57 }
 0x2ec   : > { %1296 = vmatprep.subr.bf16.mxu1 %v1686_v0 }
 0x2f1   : > { %v630_v61 = vpop.permute.xlu0 %629 }
 0x2f2   : > { %1287 = vmatmul.mubr.msk.bf16.vlgmr.msra.gmra.mrb[0].mxu1 %vm501_vm3, %v497_v59 }
 0x2f3   : > { %1297 = vmatpush3.bf16.xpose.msra.mxu1 %v506_v57  ;;  %1298 = vmatprep.mubr.msk.bf16.mxu1 %vm1687_vm0, %v1686_v0 }
 0x2f4   : > { %1308 = vmatprep.subr.bf16.mxu1 %v1686_v0 }
 0x2f5   : > { %v755_v63 = vpop.permute.xlu0 %754 }
 0x2f9   : > { %v888_v1 = vpop.permute.xlu1 %887 }
 0x2fa   : > { %1299 = vmatmul.mubr.msk.bf16.vlgmr.msra.gmra.mrb[4].mxu1 %vm501_vm3, %v630_v61 }
 0x2fb   : > { %1309 = vmatpush3.bf16.xpose.msra.mxu1 %v763_v62  ;;  %1310 = vmatprep.mubr.msk.bf16.mxu1 %vm1687_vm0, %v1686_v0 }
 0x2fc   : > { %1320 = vmatprep.subr.bf16.mxu1 %v1686_v0 }
 0x302   : > { %1311 = vmatmul.mubr.msk.bf16.vlgmr.msra.gmra.mrb[8].mxu1 %vm501_vm3, %v755_v63 }
 0x303   : > { %1321 = vmatpush3.bf16.xpose.msra.mxu1 %v763_v62  ;;  %1322 = vmatprep.mubr.msk.bf16.mxu1 %vm1687_vm0, %v1686_v0 }
 0x304   : > { %1332 = vmatprep.subr.bf16.mxu1 %v1686_v0 }
 0x30a   : > { %1323 = vmatmul.mubr.msk.bf16.vlgmr.msra.gmra.mrb[12].mxu1 %vm501_vm3, %v888_v1 }
 0x30b   : > { %1336 = vmatprep.mubr.msk.bf16.mxu1 %vm1687_vm0, %v1686_v0 }
 0x3c5   : > { %v542_v3 = vpop.f32.mrb[0].mxu1 }
 0x3c6   : > { %v543_v4 = vadd.f32 %v542_v3, %v449_v2  ;;  %v1288_v6 = vpop.f32.mrb[1].mxu1 }
 0x3c7   : > { %v545_v7 = vpop.f32.mrb[2].mxu1 }
 0x3c8   : > { %v1289_v8 = vpop.f32.mrb[3].mxu1  ;;  %v548_v9 = vsel %vm501_vm3, %v543_v4, -inf }
 0x3c9   : > { %549 = vmax.xlane.f32.xlu0 %v548_v9 }
 0x3cd   : > { %v668_v10 = vpop.f32.mrb[4].mxu1 }
 0x3ce   : > { %v669_v11 = vadd.f32 %v668_v10, %v449_v2  ;;  %v1300_v12 = vpop.f32.mrb[5].mxu1 }
 0x3cf   : > { %v671_v13 = vpop.f32.mrb[6].mxu1 }
 0x3d0   : > { %v1301_v14 = vpop.f32.mrb[7].mxu1  ;;  %v674_v15 = vsel %vm501_vm3, %v669_v11, -inf }
 0x3d1   : > { %675 = vmax.xlane.f32.xlu1 %v674_v15 }
 0x3d5   : > { %v799_v16 = vpop.f32.mrb[8].mxu1 }
 0x3d6   : > { %v800_v17 = vadd.f32 %v799_v16, %v449_v2  ;;  %v1312_v18 = vpop.f32.mrb[9].mxu1  ;;  %v1437_v16 = vld [vmem:[%s2157_s5] sm:$0xff]  }
 0x3d7   : > { %v802_v19 = vpop.f32.mrb[10].mxu1  ;;  %1333 = vmatpush3.bf16.msra.mxu1 %v1437_v16  ;;  %v1438_v18 = vld [vmem:[%s2157_s5 + $0x8] sm:$0xff]  }
 0x3d8   : > { %v1313_v20 = vpop.f32.mrb[11].mxu1  ;;  %v805_v21 = vsel %vm501_vm3, %v800_v17, -inf  ;;  %1334 = vmatprep.subr.bf16.mxu1 %v1686_v0 }
 0x3d9   : > { %806 = vmax.xlane.f32.xlu0 %v805_v21 }
 0x3db   : > { %1335 = vmatpush3.bf16.msra.mxu1 %v1438_v18 }
 0x3dd   : > { %v926_v22 = vpop.f32.mrb[12].mxu1 }
 0x3de   : > { %v927_v23 = vadd.f32 %v926_v22, %v449_v2  ;;  %v1324_v24 = vpop.f32.mrb[13].mxu1 }
 0x3df   : > { %v929_v25 = vpop.f32.mrb[14].mxu1 }
 0x3e0   : > { %v1325_v26 = vpop.f32.mrb[15].mxu1  ;;  %v932_v27 = vsel %vm501_vm3, %v927_v23, -inf }
 0x3e1   : > { %933 = vmax.xlane.f32.xlu0 %v932_v27 }
 0x456   : > { %v550_v28 = vpop.xlane.xlu0 %549 }
 0x457   : > { %v551_v29 = vsub.f32 %v543_v4, %v550_v28 }
 0x459   : > { %v552_v30 = vmul.f32 1.442695, %v551_v29 }
 0x45b   : > { %1439 = vpow2.f32 %v552_v30 }
 0x45e   : > { %v676_v31 = vpop.xlane.xlu1 %675 }
 0x45f   : > { %v677_v32 = vsub.f32 %v669_v11, %v676_v31 }
 0x461   : > { %v678_v33 = vmul.f32 1.442695, %v677_v32 }
 0x463   : > { %1441 = vpow2.f32 %v678_v33 }
 0x465   : > { %v1440_v34 = vpop.eup %1439 }
 0x466   : > { %v807_v35 = vpop.xlane.xlu0 %806  ;;  %v554_v36 = vsel %vm501_vm3, %v1440_v34, 0.0 }
 0x467   : > { %v808_v37 = vsub.f32 %v800_v17, %v807_v35  ;;  %555 = vadd.xlane.f32.xlu1 %v554_v36 }
 0x469   : > { %v809_v38 = vmul.f32 1.442695, %v808_v37 }
 0x46b   : > { %1443 = vpow2.f32 %v809_v38 }
 0x46d   : > { %v1442_v39 = vpop.eup %1441 }
 0x46e   : > { %v934_v40 = vpop.xlane.xlu0 %933  ;;  %v680_v41 = vsel %vm501_vm3, %v1442_v39, 0.0 }
 0x46f   : > { %v935_v42 = vsub.f32 %v927_v23, %v934_v40  ;;  %681 = vadd.xlane.f32.xlu0 %v680_v41 }
 0x471   : > { %v936_v43 = vmul.f32 1.442695, %v935_v42 }
 0x473   : > { %1445 = vpow2.f32 %v936_v43 }
 0x475   : > { %v1444_v44 = vpop.eup %1443 }
 0x476   : > { %v811_v45 = vsel %vm501_vm3, %v1444_v44, 0.0 }
 0x477   : > { %812 = vadd.xlane.f32.xlu1 %v811_v45 }
 0x47d   : > { %v1446_v46 = vpop.eup %1445 }
 0x47e   : > { %v938_v47 = vsel %vm501_vm3, %v1446_v46, 0.0 }
 0x47f   : > { %939 = vadd.xlane.f32.xlu0 %v938_v47 }
 0x488   : > { %561 = vrot.lane.b32.xlu1 %v471_v48, %s1705_s8 }
 0x495   : > { %817 = vrot.lane.b32.xlu0 %v471_v48, %s1706_s16 }
 0x4f4   : > { %v556_v49 = vpop.xlane.xlu1 %555 }
 0x4f5   : > { %1447 = vrcp.f32 %v556_v49 }
 0x4fc   : > { %v682_v50 = vpop.xlane.xlu0 %681 }
 0x4fd   : > { %1449 = vrcp.f32 %v682_v50 }
 0x4ff   : > { %v1448_v51 = vpop.eup %1447 }
 0x500   : > { %v558_v53 = vmul.f32 %v1448_v51, %v1440_v34 }
 0x502   : > { %v559_v56 = vpack.c.bf16 %v558_v53, %v558_v53 }
 0x504   : > { %v813_v52 = vpop.xlane.xlu1 %812 }
 0x505   : > { %1451 = vrcp.f32 %v813_v52 }
 0x507   : > { %v1450_v5 = vpop.eup %1449 }
 0x508   : > { %v562_v54 = vpop.permute.xlu1 %561  ;;  %v684_v58 = vmul.f32 %v1450_v5, %v1442_v39 }
 0x509   : > { %v568_v55 = vsel %vm566_vm4, %v562_v54, 0 }
 0x50a   : > { %1291 = vmatpush3.bf16.msra.mxu0 %v568_v55  ;;  %v685_v60 = vpack.c.bf16 %v684_v58, %v684_v58 }
 0x50b   : > { %1302 = vmatprep.subr.bf16.mxu0 %v1686_v0 }
 0x50c   : > { %v940_v57 = vpop.xlane.xlu0 %939 }
 0x50d   : > { %1293 = vmatmul.mubr.msk.bf16.vlgmr.msra.gmra.mrb[4].mxu0 %vm501_vm3, %v559_v56  ;;  %1453 = vrcp.f32 %v940_v57 }
 0x50e   : > { %1303 = vmatpush3.bf16.msra.mxu0 %v568_v55  ;;  %1304 = vmatprep.mubr.msk.bf16.mxu0 %vm1687_vm0, %v1686_v0 }
 0x50f   : > { %1314 = vmatprep.subr.bf16.mxu0 %v1686_v0  ;;  %v1452_v61 = vpop.eup %1451 }
 0x510   : > { %v818_v59 = vpop.permute.xlu0 %817  ;;  %v815_v63 = vmul.f32 %v1452_v61, %v1444_v44 }
 0x511   : > { %v823_v62 = vsel %vm566_vm4, %v818_v59, 0 }
 0x512   : > { %v816_v1 = vpack.c.bf16 %v815_v63, %v815_v63 }
 0x515   : > { %1305 = vmatmul.mubr.msk.bf16.vlgmr.msra.gmra.mrb[8].mxu0 %vm501_vm3, %v685_v60 }
 0x516   : > { %1315 = vmatpush3.bf16.msra.mxu0 %v823_v62  ;;  %1316 = vmatprep.mubr.msk.bf16.mxu0 %vm1687_vm0, %v1686_v0 }
 0x517   : > { %1326 = vmatprep.subr.bf16.mxu0 %v1686_v0  ;;  %v1454_v2 = vpop.eup %1453 }
 0x518   : > { %v942_v3 = vmul.f32 %v1454_v2, %v1446_v46 }
 0x51a   : > { %v943_v4 = vpack.c.bf16 %v942_v3, %v942_v3 }
 0x51d   : > { %1317 = vmatmul.mubr.msk.bf16.vlgmr.msra.gmra.mrb[12].mxu0 %vm501_vm3, %v816_v1 }
 0x51e   : > { %1327 = vmatpush3.bf16.msra.mxu0 %v823_v62  ;;  %1328 = vmatprep.mubr.msk.bf16.mxu0 %vm1687_vm0, %v1686_v0 }
 0x525   : > { %1329 = vmatmul.mubr.msk.bf16.vlgmr.msra.gmra.mrb[16].mxu0 %vm501_vm3, %v943_v4 }
 0x5e0   : > { %v604_v6 = vpop.f32.mrb[4].mxu0 }
 0x5e1   : > { %v610_v7 = vpack.c.bf16 %v604_v6, %v604_v6  ;;  %v1294_v8 = vpop.f32.mrb[5].mxu0 }
 0x5e2   : > { %v607_v9 = vpop.f32.mrb[6].mxu0 }
 0x5e3   : > { %612 = vst.msk [vmem:[#allocation2] sm:$0xf] %vm611_vm5, %v610_v7  ;;  %v1295_v10 = vpop.f32.mrb[7].mxu0 }
 0x5e8   : > { %v723_v11 = vpop.f32.mrb[8].mxu0 }
 0x5e9   : > { %v1251_v12 = vpack.c.bf16 %v723_v11, %v723_v11  ;;  %v1306_v13 = vpop.f32.mrb[9].mxu0 }
 0x5ea   : > { %v726_v14 = vpop.f32.mrb[10].mxu0 }
 0x5eb   : > { %733 = vrot.lane.b32.xlu1 %v1251_v12, %s1698_s7  ;;  %v1307_v15 = vpop.f32.mrb[11].mxu0  ;;  %s383_s7 = scalar_lea.vmem [#allocation11], %s1973_s2  ;;  %s1707_s2 = smov [#allocation11]  }
 0x5ec   : > { %s1071_s26 = sshll.u32 %s383_s7, 4  ;;  %s1607_s10 = sshll.u32 %s1707_s2, 4  ;;  %s2108_s26 = int_to_ptr.vmem [resolvable:$true] %s1071_s26  ;;  %s1608_s10 = int_to_ptr.vmem [resolvable:$false] %s1607_s10 }
 0x5ed   : > { %s1609_s15 = scalar_lea.vmem %s1608_s10, 256  ;;  %p1610_p12 = scmp.lt.s32.totalorder %s2108_s26, %s1608_s10 }
 0x5f0   : > { %v859_v17 = vpop.f32.mrb[12].mxu0 }
 0x5f1   : > { %v1252_v19 = vpack.c.bf16 %v859_v17, %v859_v17  ;;  %v1318_v20 = vpop.f32.mrb[13].mxu0 }
 0x5f2   : > { %v862_v21 = vpop.f32.mrb[14].mxu0 }
 0x5f3   : > { %869 = vrot.lane.b32.xlu1 %v1252_v19, %s1696_s17  ;;  %v1319_v22 = vpop.f32.mrb[15].mxu0  ;;  %s1248_s17 = sshll.u32 %s1881_s27, 7  ;;  %s1603_s27 = scalar_lea.vmem %s2108_s26, 128 }
 0x5f4   : > { %s2106_s20 = scalar_lea.hbm %s2158_s6, %s1248_s17  ;;  %p1604_p1 = scmp.ne.s32.totalorder %s2108_s26, %s1603_s27 }
 0x5f5   : > { %p1611_p4 = scmp.lt.s32.totalorder %s1609_s15, %s1603_s27 }
 0x5f6   : > { %p1605_p2 = pnand %p1604_p1, %p2189_p5 }
 0x5f7   : > { %p1612_p7 = por %p1611_p4, %p1610_p12 }
 0x5f8   : > { %v981_v23 = vpop.f32.mrb[16].mxu0  ;;  %p1606_p13 = pneg %p1605_p2 }
 0x5f9   : > { %v1253_v24 = vpack.c.bf16 %v981_v23, %v981_v23  ;;  %v1330_v25 = vpop.f32.mrb[17].mxu0 }
 0x5fa   : > { %v984_v26 = vpop.f32.mrb[18].mxu0  ;;  %p1613_p9 = pnand %p1612_p7, %p1606_p13 }
 0x5fb   : > { %991 = vrot.lane.b32.xlu0 %v1253_v24, %s1697_s13  ;;  %v1331_v27 = vpop.f32.mrb[19].mxu0 }
 0x65d   : > { %v734_v28 = vpop.permute.xlu1 %733 }
 0x65e   : > { %737 = vst.msk [vmem:[#allocation2] sm:$0xf] %vm736_vm6, %v734_v28 }
 0x665   : > { %v870_v29 = vpop.permute.xlu1 %869 }
 0x666   : > { %873 = vst.msk [vmem:[#allocation2] sm:$0xf] %vm872_vm7, %v870_v29 }
 0x66d   : > { %v992_v0 = vpop.permute.xlu0 %991 }
 0x66e   : > { %995 = vst.msk [vmem:[#allocation2] sm:$0xf] %vm994_vm8, %v992_v0 }
 0x675   : > { %v996_v30 = vld [vmem:[#allocation2] sm:$0xf] }
 0x676   : > { %1337 = vmatmul.mubr.msk.bf16.vlgmr.msra.gmra.mrb[16].mxu1 %vm403_vm1, %v996_v30 }
 0x749   : > { %v1050_v31 = vpop.f32.mrb[16].mxu1 }
 0x74a   : > { %1056 = vst.msk [vmem:[%s383_s7] sm:$0xff] %vm403_vm1, %v1050_v31  ;;  %v1338_v32 = vpop.f32.mrb[17].mxu1 }
 0x74b   : > { %v1053_v33 = vpop.f32.mrb[18].mxu1 }
 0x74c   : > { %1616 = shalt.err (!%p1613_p9)
}
 0x74d   : > { %s1617_s12 = scalar_lea.hbm %s2106_s20, 128  ;;  %s1621_s16 = scalar_lea.hbm %s2158_s6, 256 }
 0x74e   : > { %p1618_p0 = scmp.ne.s32.totalorder %s2106_s20, %s1617_s12  ;;  %p1622_p11 = scmp.lt.u32.totalorder %s2106_s20, %s2158_s6 }
 0x74f   : > { %p1623_p6 = scmp.lt.u32.totalorder %s1621_s16, %s1617_s12  ;;  %p1625_p1 = scmp.lt.u32.totalorder %s1617_s12, %s2106_s20 }
 0x750   : > { %p1619_p10 = pnand %p1618_p0, %p2189_p5 }
 0x751   : > { %p1624_p3 = por %p1623_p6, %p1622_p11 }
 0x752   : > { %p1620_p8 = pneg %p1619_p10 }
 0x753   : > { %p1626_p2 = por %p1625_p1, %p1624_p3 }
 0x755   : > { %p1627_p13 = pnand %p1626_p2, %p1620_p8 }
 0x757   : > { %1630 = shalt.err (!%p1627_p13)
}
 0x758   : > { %1352 = dma.vmem_to_hbm [thread:$0]  (%p2189_p5), %s2108_s26, 128, %s2106_s20, %s1058_s29   ;;  %v1339_v34 = vpop.f32.mrb[19].mxu1 }
 0x759 PF: > { %s1083_s14 = sand.u32 1, %s1665_s21   ;;  %p2190_p12 = scmp.ne.s32.totalorder %s2180_s30, 0 }
 0x75a   : > { %p2191_p4 = scmp.ge.s32.totalorder %s1677_s24, 2  ;;  %s1084_s18 = scalar_lea.sflag [#allocation5], %s1083_s14 }
 0x75c   : > { %p1372_p7 = pnand %p2191_p4, %p2190_p12 }
 0x75e   : > { %1660 = dma.done.wait (!%p1372_p7), %s1084_s18, 128  }
 0x75f   : > { %1662 = vsyncadd (!%p1372_p7), %s1084_s18, 4294967168  ;;  %p20_p9 = scmp.ge.s32.totalorder %s1764_s25, 4   ;;  %s2192_s21 = smov %s1669_s22 }
 0x760   : > { %s2193_s22 = smov %s1673_s23  ;;  %s2194_s23 = smov %s1775_s28 }
 0x761   : > { %s2195_s24 = smov %s1764_s25  ;;  %22 = sbr.rel (!%p20_p9) target bundleno = 10 (0xa), region = 126 }
 0x768   :  { %1089 = vsyncpa [#allocation4], 1 }
 0x769   :  { %1091 = vsyncpa [#allocation4 + $0x1], 1 }
 0x76a   :  { %1092 = vsyncpa [#allocation7], 1 }
 0x76b   :  { %1093 = vsyncpa [#allocation5], 1 }
 0x76c   :  { %1095 = vsyncpa [#allocation5 + $0x1], 1 }

</bundles_post_ra>
